<compile_context>
chip_gen: v6e
topology: v6e:2x2x1
jax: 0.10.0
libtpu: 0.0.40
codegen_flags: <defaults>
</compile_context>

<pallas_src>
from functools import partial

import jax
import jax.numpy as jnp
from jax.experimental import pallas as pl
from jax.experimental.pallas import tpu as pltpu


def _dsc_kernel(x_ref, w_ref, b_ref, out_ref, xflat_ref, im2col_ref,
                *, K, pad, H, W, Wp, H_out, C):
    # x_ref:      (C, H, W)        one batch element, NCHW slice
    # w_ref:      (Q, K*K*C)       combined (depthwise*pointwise) weight
    # b_ref:      (Q, 1)           combined bias
    # out_ref:    (Q, H_out*Wp)    NCHW-flat output on the padded-width raster
    # xflat_ref:  (C, Hp*Wp + K)   zero-padded image, rows flattened (+ slack)
    # im2col_ref: (K*K*C, H_out*Wp)
    L = H_out * Wp

    # --- zero-pad into the flat scratch (borders + slack stay zero) ---------
    xflat_ref[...] = jnp.zeros_like(xflat_ref)
    for y in range(H):
        start = (y + pad) * Wp + pad
        xflat_ref[:, start:start + W] = x_ref[:, y, :]

    # --- im2col: tap (dy,dx) is one contiguous slice of the flat raster -----
    for dy in range(K):
        for dx in range(K):
            t = dy * K + dx
            off = dy * Wp + dx
            im2col_ref[t * C:(t + 1) * C, :] = xflat_ref[:, off:off + L]

    # --- single fused matmul on the MXU: (Q, K*K*C) @ (K*K*C, L) ------------
    # TODO(synk): cast matmul operands to bf16 on v6e/v7x once C*K and Q are large.
    acc = jnp.dot(w_ref[...], im2col_ref[...],
                  preferred_element_type=jnp.float32)
    out_ref[...] = (acc + b_ref[...]).astype(out_ref.dtype)


def depthwise_separable_conv(x_nchw, dw_w, dw_b, pw_w, pw_b, kernel_size):
    """Matches torch DepthwiseSeparableConv.forward for NCHW float32 input."""
    K = kernel_size
    N, C, H, W = x_nchw.shape
    pad = 1                                    # nn.Conv2d(..., padding=1)
    H_out = H + 2 * pad - K + 1
    W_out = W + 2 * pad - K + 1
    Hp, Wp = H + 2 * pad, W + 2 * pad
    Q = pw_w.shape[0]
    assert dw_w.shape == (C * K, 1, K, K)
    assert pw_w.shape == (Q, C * K, 1, 1)

    L = H_out * Wp                 # kernel output lane extent (lane-dense)
    FLAT = Hp * Wp + K             # flat padded image + slack so tap slices stay in-bounds

    hi = jax.lax.Precision.HIGHEST
    # Fold depthwise into pointwise (tiny parameter-sized einsums, done once).
    dw_wr = dw_w.reshape(C, K, K, K).astype(jnp.float32)    # [c, j, dy, dx]
    pw_wr = pw_w.reshape(Q, C, K).astype(jnp.float32)       # [q, c, j]
    w_comb = jnp.einsum('cjyx,qcj->qyxc', dw_wr, pw_wr,
                        precision=hi).reshape(Q, K * K * C)
    b_comb = (pw_b.astype(jnp.float32)
              + jnp.einsum('cj,qcj->q', dw_b.reshape(C, K).astype(jnp.float32),
                           pw_wr, precision=hi)).reshape(Q, 1)

    x = x_nchw.astype(jnp.float32)
    kernel = partial(_dsc_kernel, K=K, pad=pad, H=H, W=W, Wp=Wp,
                     H_out=H_out, C=C)

    # TODO(synk): for large H*W add a second ('parallel') grid axis over row
    # tiles (with a K-1 halo) so blocks fit v7x's 64 MiB VMEM and shard across
    # its two TensorCores; for v5e/v6e sweep the tile up toward 512+ rows.
    out_wide = pl.pallas_call(
        kernel,
        out_shape=jax.ShapeDtypeStruct((N, Q, L), jnp.float32),
        grid_spec=pltpu.PrefetchScalarGridSpec(
            num_scalar_prefetch=0,
            grid=(N,),
            in_specs=[
                pl.BlockSpec((pl.Squeezed(), C, H, W), lambda n: (n, 0, 0, 0)),
                pl.BlockSpec((Q, K * K * C), lambda n: (0, 0)),
                pl.BlockSpec((Q, 1), lambda n: (0, 0)),
            ],
            out_specs=pl.BlockSpec((pl.Squeezed(), Q, L), lambda n: (n, 0, 0)),
            scratch_shapes=[
                pltpu.VMEM((C, FLAT), jnp.float32),
                pltpu.VMEM((K * K * C, L), jnp.float32),
            ],
        ),
        compiler_params=pltpu.CompilerParams(
            dimension_semantics=("parallel",)),
    )(x, w_comb, b_comb)

    # Already NCHW-flat on the padded-width raster: free reshape, drop the
    # (Wp - W_out) junk columns per row.
    out = out_wide.reshape(N, Q, H_out, Wp)[:, :, :, :W_out]
    return out


def _reference(x, dw_w, dw_b, pw_w, pw_b):
    """Pure-JAX reference with the exact PyTorch conv semantics (NCHW)."""
    C = x.shape[1]
    hi = jax.lax.Precision.HIGHEST
    dw = jax.lax.conv_general_dilated(
        x, dw_w, window_strides=(1, 1), padding=((1, 1), (1, 1)),
        dimension_numbers=("NCHW", "OIHW", "NCHW"), feature_group_count=C,
        precision=hi)
    dw = dw + dw_b[None, :, None, None]
    pw = jax.lax.conv_general_dilated(
        dw, pw_w, window_strides=(1, 1), padding=((0, 0), (0, 0)),
        dimension_numbers=("NCHW", "OIHW", "NCHW"), precision=hi)
    return pw + pw_b[None, :, None, None]


if __name__ == "__main__":
    key = jax.random.PRNGKey(0)
    N, C, H, W = 2, 4, 16, 16          # batch, in_channels, spatial
    K = 3                              # kernel_size
    Q = 8                              # out_channels

    k1, k2, k3, k4, k5 = jax.random.split(key, 5)
    x = jax.random.normal(k1, (N, C, H, W), jnp.float32)
    # Module parameter shapes:
    #   depthwise: Conv2d(C, C*K, K, padding=1, groups=C) -> w (C*K,1,K,K), b (C*K,)
    #   pointwise: Conv2d(C*K, Q, 1)                      -> w (Q,C*K,1,1), b (Q,)
    dw_w = jax.random.normal(k2, (C * K, 1, K, K), jnp.float32) * 0.1
    dw_b = jax.random.normal(k3, (C * K,), jnp.float32) * 0.1
    pw_w = jax.random.normal(k4, (Q, C * K, 1, 1), jnp.float32) * 0.1
    pw_b = jax.random.normal(k5, (Q,), jnp.float32) * 0.1

    out = depthwise_separable_conv(x, dw_w, dw_b, pw_w, pw_b, K)
    out = jax.block_until_ready(out)
    assert out.shape == (N, Q, H, W), out.shape

    ref = _reference(x, dw_w, dw_b, pw_w, pw_b)
    assert jnp.allclose(out, ref, atol=1e-4, rtol=1e-4), float(
        jnp.max(jnp.abs(out - ref)))

    print("KERNEL_OK")
</pallas_src>

<mosaic_0001>
module attributes {stable_mosaic.version = 11 : i64} {
  func.func @_dsc_kernel(%arg0: i32, %arg1: memref<1x4x16x16xf32, #tpu.memory_space<vmem>>, %arg2: memref<8x36xf32, #tpu.memory_space<vmem>>, %arg3: memref<8x1xf32, #tpu.memory_space<vmem>>, %arg4: memref<1x8x288xf32, #tpu.memory_space<vmem>>, %arg5: memref<4x327xf32, #tpu.memory_space<vmem>>, %arg6: memref<36x288xf32, #tpu.memory_space<vmem>>) attributes {dimension_semantics = [#tpu.dimension_semantics<parallel>], iteration_bounds = array<i64: 2>, scalar_prefetch = 0 : i64, scratch_operands = 2 : i64, tpu.core_type = #tpu.core_type<tc>, window_params = [{transform_indices = @transform_0, window_bounds = array<i64: 1, 4, 16, 16>}, {pipeline_mode = #tpu.pipeline_mode<synchronous>, transform_indices = @transform_1, window_bounds = array<i64: 8, 36>}, {pipeline_mode = #tpu.pipeline_mode<synchronous>, transform_indices = @transform_2, window_bounds = array<i64: 8, 1>}, {transform_indices = @transform_3, window_bounds = array<i64: 1, 8, 288>}]} {
    %cst = arith.constant 0.000000e+00 : f32
    %0 = vector.broadcast %cst : f32 to vector<4x327xf32>
    %c0 = arith.constant 0 : index
    %c0_0 = arith.constant 0 : index
    %1 = vector.load %arg5[%c0, %c0_0] : memref<4x327xf32, #tpu.memory_space<vmem>>, vector<4x327xf32>
    tpu.vector_store %arg5[%c0, %c0_0], %0 {strides = array<i32>} : memref<4x327xf32, #tpu.memory_space<vmem>>, vector<4x327xf32>,
    %c0_1 = arith.constant 0 : index
    %c0_2 = arith.constant 0 : index
    %c0_3 = arith.constant 0 : index
    %c0_4 = arith.constant 0 : index
    %2 = vector.load %arg1[%c0_1, %c0_2, %c0_3, %c0_4] : memref<1x4x16x16xf32, #tpu.memory_space<vmem>>, vector<1x4x1x16xf32>
    %3 = vector.shape_cast %2 : vector<1x4x1x16xf32> to vector<4x16xf32>
    %c0_5 = arith.constant 0 : index
    %c19 = arith.constant 19 : index
    %4 = vector.load %arg5[%c0_5, %c19] : memref<4x327xf32, #tpu.memory_space<vmem>>, vector<4x16xf32>
    tpu.vector_store %arg5[%c0_5, %c19], %3 {strides = array<i32>} : memref<4x327xf32, #tpu.memory_space<vmem>>, vector<4x16xf32>,
    %c0_6 = arith.constant 0 : index
    %c0_7 = arith.constant 0 : index
    %c1 = arith.constant 1 : index
    %c0_8 = arith.constant 0 : index
    %5 = vector.load %arg1[%c0_6, %c0_7, %c1, %c0_8] : memref<1x4x16x16xf32, #tpu.memory_space<vmem>>, vector<1x4x1x16xf32>
    %6 = vector.shape_cast %5 : vector<1x4x1x16xf32> to vector<4x16xf32>
    %c0_9 = arith.constant 0 : index
    %c37 = arith.constant 37 : index
    %7 = vector.load %arg5[%c0_9, %c37] : memref<4x327xf32, #tpu.memory_space<vmem>>, vector<4x16xf32>
    tpu.vector_store %arg5[%c0_9, %c37], %6 {strides = array<i32>} : memref<4x327xf32, #tpu.memory_space<vmem>>, vector<4x16xf32>,
    %c0_10 = arith.constant 0 : index
    %c0_11 = arith.constant 0 : index
    %c2 = arith.constant 2 : index
    %c0_12 = arith.constant 0 : index
    %8 = vector.load %arg1[%c0_10, %c0_11, %c2, %c0_12] : memref<1x4x16x16xf32, #tpu.memory_space<vmem>>, vector<1x4x1x16xf32>
    %9 = vector.shape_cast %8 : vector<1x4x1x16xf32> to vector<4x16xf32>
    %c0_13 = arith.constant 0 : index
    %c55 = arith.constant 55 : index
    %10 = vector.load %arg5[%c0_13, %c55] : memref<4x327xf32, #tpu.memory_space<vmem>>, vector<4x16xf32>
    tpu.vector_store %arg5[%c0_13, %c55], %9 {strides = array<i32>} : memref<4x327xf32, #tpu.memory_space<vmem>>, vector<4x16xf32>,
    %c0_14 = arith.constant 0 : index
    %c0_15 = arith.constant 0 : index
    %c3 = arith.constant 3 : index
    %c0_16 = arith.constant 0 : index
    %11 = vector.load %arg1[%c0_14, %c0_15, %c3, %c0_16] : memref<1x4x16x16xf32, #tpu.memory_space<vmem>>, vector<1x4x1x16xf32>
    %12 = vector.shape_cast %11 : vector<1x4x1x16xf32> to vector<4x16xf32>
    %c0_17 = arith.constant 0 : index
    %c73 = arith.constant 73 : index
    %13 = vector.load %arg5[%c0_17, %c73] : memref<4x327xf32, #tpu.memory_space<vmem>>, vector<4x16xf32>
    tpu.vector_store %arg5[%c0_17, %c73], %12 {strides = array<i32>} : memref<4x327xf32, #tpu.memory_space<vmem>>, vector<4x16xf32>,
    %c0_18 = arith.constant 0 : index
    %c0_19 = arith.constant 0 : index
    %c4 = arith.constant 4 : index
    %c0_20 = arith.constant 0 : index
    %14 = vector.load %arg1[%c0_18, %c0_19, %c4, %c0_20] : memref<1x4x16x16xf32, #tpu.memory_space<vmem>>, vector<1x4x1x16xf32>
    %15 = vector.shape_cast %14 : vector<1x4x1x16xf32> to vector<4x16xf32>
    %c0_21 = arith.constant 0 : index
    %c91 = arith.constant 91 : index
    %16 = vector.load %arg5[%c0_21, %c91] : memref<4x327xf32, #tpu.memory_space<vmem>>, vector<4x16xf32>
    tpu.vector_store %arg5[%c0_21, %c91], %15 {strides = array<i32>} : memref<4x327xf32, #tpu.memory_space<vmem>>, vector<4x16xf32>,
    %c0_22 = arith.constant 0 : index
    %c0_23 = arith.constant 0 : index
    %c5 = arith.constant 5 : index
    %c0_24 = arith.constant 0 : index
    %17 = vector.load %arg1[%c0_22, %c0_23, %c5, %c0_24] : memref<1x4x16x16xf32, #tpu.memory_space<vmem>>, vector<1x4x1x16xf32>
    %18 = vector.shape_cast %17 : vector<1x4x1x16xf32> to vector<4x16xf32>
    %c0_25 = arith.constant 0 : index
    %c109 = arith.constant 109 : index
    %19 = vector.load %arg5[%c0_25, %c109] : memref<4x327xf32, #tpu.memory_space<vmem>>, vector<4x16xf32>
    tpu.vector_store %arg5[%c0_25, %c109], %18 {strides = array<i32>} : memref<4x327xf32, #tpu.memory_space<vmem>>, vector<4x16xf32>,
    %c0_26 = arith.constant 0 : index
    %c0_27 = arith.constant 0 : index
    %c6 = arith.constant 6 : index
    %c0_28 = arith.constant 0 : index
    %20 = vector.load %arg1[%c0_26, %c0_27, %c6, %c0_28] : memref<1x4x16x16xf32, #tpu.memory_space<vmem>>, vector<1x4x1x16xf32>
    %21 = vector.shape_cast %20 : vector<1x4x1x16xf32> to vector<4x16xf32>
    %c0_29 = arith.constant 0 : index
    %c127 = arith.constant 127 : index
    %22 = vector.load %arg5[%c0_29, %c127] : memref<4x327xf32, #tpu.memory_space<vmem>>, vector<4x16xf32>
    tpu.vector_store %arg5[%c0_29, %c127], %21 {strides = array<i32>} : memref<4x327xf32, #tpu.memory_space<vmem>>, vector<4x16xf32>,
    %c0_30 = arith.constant 0 : index
    %c0_31 = arith.constant 0 : index
    %c7 = arith.constant 7 : index
    %c0_32 = arith.constant 0 : index
    %23 = vector.load %arg1[%c0_30, %c0_31, %c7, %c0_32] : memref<1x4x16x16xf32, #tpu.memory_space<vmem>>, vector<1x4x1x16xf32>
    %24 = vector.shape_cast %23 : vector<1x4x1x16xf32> to vector<4x16xf32>
    %c0_33 = arith.constant 0 : index
    %c145 = arith.constant 145 : index
    %25 = vector.load %arg5[%c0_33, %c145] : memref<4x327xf32, #tpu.memory_space<vmem>>, vector<4x16xf32>
    tpu.vector_store %arg5[%c0_33, %c145], %24 {strides = array<i32>} : memref<4x327xf32, #tpu.memory_space<vmem>>, vector<4x16xf32>,
    %c0_34 = arith.constant 0 : index
    %c0_35 = arith.constant 0 : index
    %c8 = arith.constant 8 : index
    %c0_36 = arith.constant 0 : index
    %26 = vector.load %arg1[%c0_34, %c0_35, %c8, %c0_36] : memref<1x4x16x16xf32, #tpu.memory_space<vmem>>, vector<1x4x1x16xf32>
    %27 = vector.shape_cast %26 : vector<1x4x1x16xf32> to vector<4x16xf32>
    %c0_37 = arith.constant 0 : index
    %c163 = arith.constant 163 : index
    %28 = vector.load %arg5[%c0_37, %c163] : memref<4x327xf32, #tpu.memory_space<vmem>>, vector<4x16xf32>
    tpu.vector_store %arg5[%c0_37, %c163], %27 {strides = array<i32>} : memref<4x327xf32, #tpu.memory_space<vmem>>, vector<4x16xf32>,
    %c0_38 = arith.constant 0 : index
    %c0_39 = arith.constant 0 : index
    %c9 = arith.constant 9 : index
    %c0_40 = arith.constant 0 : index
    %29 = vector.load %arg1[%c0_38, %c0_39, %c9, %c0_40] : memref<1x4x16x16xf32, #tpu.memory_space<vmem>>, vector<1x4x1x16xf32>
    %30 = vector.shape_cast %29 : vector<1x4x1x16xf32> to vector<4x16xf32>
    %c0_41 = arith.constant 0 : index
    %c181 = arith.constant 181 : index
    %31 = vector.load %arg5[%c0_41, %c181] : memref<4x327xf32, #tpu.memory_space<vmem>>, vector<4x16xf32>
    tpu.vector_store %arg5[%c0_41, %c181], %30 {strides = array<i32>} : memref<4x327xf32, #tpu.memory_space<vmem>>, vector<4x16xf32>,
    %c0_42 = arith.constant 0 : index
    %c0_43 = arith.constant 0 : index
    %c10 = arith.constant 10 : index
    %c0_44 = arith.constant 0 : index
    %32 = vector.load %arg1[%c0_42, %c0_43, %c10, %c0_44] : memref<1x4x16x16xf32, #tpu.memory_space<vmem>>, vector<1x4x1x16xf32>
    %33 = vector.shape_cast %32 : vector<1x4x1x16xf32> to vector<4x16xf32>
    %c0_45 = arith.constant 0 : index
    %c199 = arith.constant 199 : index
    %34 = vector.load %arg5[%c0_45, %c199] : memref<4x327xf32, #tpu.memory_space<vmem>>, vector<4x16xf32>
    tpu.vector_store %arg5[%c0_45, %c199], %33 {strides = array<i32>} : memref<4x327xf32, #tpu.memory_space<vmem>>, vector<4x16xf32>,
    %c0_46 = arith.constant 0 : index
    %c0_47 = arith.constant 0 : index
    %c11 = arith.constant 11 : index
    %c0_48 = arith.constant 0 : index
    %35 = vector.load %arg1[%c0_46, %c0_47, %c11, %c0_48] : memref<1x4x16x16xf32, #tpu.memory_space<vmem>>, vector<1x4x1x16xf32>
    %36 = vector.shape_cast %35 : vector<1x4x1x16xf32> to vector<4x16xf32>
    %c0_49 = arith.constant 0 : index
    %c217 = arith.constant 217 : index
    %37 = vector.load %arg5[%c0_49, %c217] : memref<4x327xf32, #tpu.memory_space<vmem>>, vector<4x16xf32>
    tpu.vector_store %arg5[%c0_49, %c217], %36 {strides = array<i32>} : memref<4x327xf32, #tpu.memory_space<vmem>>, vector<4x16xf32>,
    %c0_50 = arith.constant 0 : index
    %c0_51 = arith.constant 0 : index
    %c12 = arith.constant 12 : index
    %c0_52 = arith.constant 0 : index
    %38 = vector.load %arg1[%c0_50, %c0_51, %c12, %c0_52] : memref<1x4x16x16xf32, #tpu.memory_space<vmem>>, vector<1x4x1x16xf32>
    %39 = vector.shape_cast %38 : vector<1x4x1x16xf32> to vector<4x16xf32>
    %c0_53 = arith.constant 0 : index
    %c235 = arith.constant 235 : index
    %40 = vector.load %arg5[%c0_53, %c235] : memref<4x327xf32, #tpu.memory_space<vmem>>, vector<4x16xf32>
    tpu.vector_store %arg5[%c0_53, %c235], %39 {strides = array<i32>} : memref<4x327xf32, #tpu.memory_space<vmem>>, vector<4x16xf32>,
    %c0_54 = arith.constant 0 : index
    %c0_55 = arith.constant 0 : index
    %c13 = arith.constant 13 : index
    %c0_56 = arith.constant 0 : index
    %41 = vector.load %arg1[%c0_54, %c0_55, %c13, %c0_56] : memref<1x4x16x16xf32, #tpu.memory_space<vmem>>, vector<1x4x1x16xf32>
    %42 = vector.shape_cast %41 : vector<1x4x1x16xf32> to vector<4x16xf32>
    %c0_57 = arith.constant 0 : index
    %c253 = arith.constant 253 : index
    %43 = vector.load %arg5[%c0_57, %c253] : memref<4x327xf32, #tpu.memory_space<vmem>>, vector<4x16xf32>
    tpu.vector_store %arg5[%c0_57, %c253], %42 {strides = array<i32>} : memref<4x327xf32, #tpu.memory_space<vmem>>, vector<4x16xf32>,
    %c0_58 = arith.constant 0 : index
    %c0_59 = arith.constant 0 : index
    %c14 = arith.constant 14 : index
    %c0_60 = arith.constant 0 : index
    %44 = vector.load %arg1[%c0_58, %c0_59, %c14, %c0_60] : memref<1x4x16x16xf32, #tpu.memory_space<vmem>>, vector<1x4x1x16xf32>
    %45 = vector.shape_cast %44 : vector<1x4x1x16xf32> to vector<4x16xf32>
    %c0_61 = arith.constant 0 : index
    %c271 = arith.constant 271 : index
    %46 = vector.load %arg5[%c0_61, %c271] : memref<4x327xf32, #tpu.memory_space<vmem>>, vector<4x16xf32>
    tpu.vector_store %arg5[%c0_61, %c271], %45 {strides = array<i32>} : memref<4x327xf32, #tpu.memory_space<vmem>>, vector<4x16xf32>,
    %c0_62 = arith.constant 0 : index
    %c0_63 = arith.constant 0 : index
    %c15 = arith.constant 15 : index
    %c0_64 = arith.constant 0 : index
    %47 = vector.load %arg1[%c0_62, %c0_63, %c15, %c0_64] : memref<1x4x16x16xf32, #tpu.memory_space<vmem>>, vector<1x4x1x16xf32>
    %48 = vector.shape_cast %47 : vector<1x4x1x16xf32> to vector<4x16xf32>
    %c0_65 = arith.constant 0 : index
    %c289 = arith.constant 289 : index
    %49 = vector.load %arg5[%c0_65, %c289] : memref<4x327xf32, #tpu.memory_space<vmem>>, vector<4x16xf32>
    tpu.vector_store %arg5[%c0_65, %c289], %48 {strides = array<i32>} : memref<4x327xf32, #tpu.memory_space<vmem>>, vector<4x16xf32>,
    %c0_66 = arith.constant 0 : index
    %c0_67 = arith.constant 0 : index
    %50 = vector.load %arg5[%c0_66, %c0_67] : memref<4x327xf32, #tpu.memory_space<vmem>>, vector<4x288xf32>
    %c0_68 = arith.constant 0 : index
    %c0_69 = arith.constant 0 : index
    %51 = vector.load %arg6[%c0_68, %c0_69] : memref<36x288xf32, #tpu.memory_space<vmem>>, vector<4x288xf32>
    tpu.vector_store %arg6[%c0_68, %c0_69], %50 {strides = array<i32>} : memref<36x288xf32, #tpu.memory_space<vmem>>, vector<4x288xf32>,
    %c0_70 = arith.constant 0 : index
    %c1_71 = arith.constant 1 : index
    %52 = vector.load %arg5[%c0_70, %c1_71] : memref<4x327xf32, #tpu.memory_space<vmem>>, vector<4x288xf32>
    %c4_72 = arith.constant 4 : index
    %c0_73 = arith.constant 0 : index
    %53 = vector.load %arg6[%c4_72, %c0_73] : memref<36x288xf32, #tpu.memory_space<vmem>>, vector<4x288xf32>
    tpu.vector_store %arg6[%c4_72, %c0_73], %52 {strides = array<i32>} : memref<36x288xf32, #tpu.memory_space<vmem>>, vector<4x288xf32>,
    %c0_74 = arith.constant 0 : index
    %c2_75 = arith.constant 2 : index
    %54 = vector.load %arg5[%c0_74, %c2_75] : memref<4x327xf32, #tpu.memory_space<vmem>>, vector<4x288xf32>
    %c8_76 = arith.constant 8 : index
    %c0_77 = arith.constant 0 : index
    %55 = vector.load %arg6[%c8_76, %c0_77] : memref<36x288xf32, #tpu.memory_space<vmem>>, vector<4x288xf32>
    tpu.vector_store %arg6[%c8_76, %c0_77], %54 {strides = array<i32>} : memref<36x288xf32, #tpu.memory_space<vmem>>, vector<4x288xf32>,
    %c0_78 = arith.constant 0 : index
    %c18 = arith.constant 18 : index
    %56 = vector.load %arg5[%c0_78, %c18] : memref<4x327xf32, #tpu.memory_space<vmem>>, vector<4x288xf32>
    %c12_79 = arith.constant 12 : index
    %c0_80 = arith.constant 0 : index
    %57 = vector.load %arg6[%c12_79, %c0_80] : memref<36x288xf32, #tpu.memory_space<vmem>>, vector<4x288xf32>
    tpu.vector_store %arg6[%c12_79, %c0_80], %56 {strides = array<i32>} : memref<36x288xf32, #tpu.memory_space<vmem>>, vector<4x288xf32>,
    %c0_81 = arith.constant 0 : index
    %c19_82 = arith.constant 19 : index
    %58 = vector.load %arg5[%c0_81, %c19_82] : memref<4x327xf32, #tpu.memory_space<vmem>>, vector<4x288xf32>
    %c16 = arith.constant 16 : index
    %c0_83 = arith.constant 0 : index
    %59 = vector.load %arg6[%c16, %c0_83] : memref<36x288xf32, #tpu.memory_space<vmem>>, vector<4x288xf32>
    tpu.vector_store %arg6[%c16, %c0_83], %58 {strides = array<i32>} : memref<36x288xf32, #tpu.memory_space<vmem>>, vector<4x288xf32>,
    %c0_84 = arith.constant 0 : index
    %c20 = arith.constant 20 : index
    %60 = vector.load %arg5[%c0_84, %c20] : memref<4x327xf32, #tpu.memory_space<vmem>>, vector<4x288xf32>
    %c20_85 = arith.constant 20 : index
    %c0_86 = arith.constant 0 : index
    %61 = vector.load %arg6[%c20_85, %c0_86] : memref<36x288xf32, #tpu.memory_space<vmem>>, vector<4x288xf32>
    tpu.vector_store %arg6[%c20_85, %c0_86], %60 {strides = array<i32>} : memref<36x288xf32, #tpu.memory_space<vmem>>, vector<4x288xf32>,
    %c0_87 = arith.constant 0 : index
    %c36 = arith.constant 36 : index
    %62 = vector.load %arg5[%c0_87, %c36] : memref<4x327xf32, #tpu.memory_space<vmem>>, vector<4x288xf32>
    %c24 = arith.constant 24 : index
    %c0_88 = arith.constant 0 : index
    %63 = vector.load %arg6[%c24, %c0_88] : memref<36x288xf32, #tpu.memory_space<vmem>>, vector<4x288xf32>
    tpu.vector_store %arg6[%c24, %c0_88], %62 {strides = array<i32>} : memref<36x288xf32, #tpu.memory_space<vmem>>, vector<4x288xf32>,
    %c0_89 = arith.constant 0 : index
    %c37_90 = arith.constant 37 : index
    %64 = vector.load %arg5[%c0_89, %c37_90] : memref<4x327xf32, #tpu.memory_space<vmem>>, vector<4x288xf32>
    %c28 = arith.constant 28 : index
    %c0_91 = arith.constant 0 : index
    %65 = vector.load %arg6[%c28, %c0_91] : memref<36x288xf32, #tpu.memory_space<vmem>>, vector<4x288xf32>
    tpu.vector_store %arg6[%c28, %c0_91], %64 {strides = array<i32>} : memref<36x288xf32, #tpu.memory_space<vmem>>, vector<4x288xf32>,
    %c0_92 = arith.constant 0 : index
    %c38 = arith.constant 38 : index
    %66 = vector.load %arg5[%c0_92, %c38] : memref<4x327xf32, #tpu.memory_space<vmem>>, vector<4x288xf32>
    %c32 = arith.constant 32 : index
    %c0_93 = arith.constant 0 : index
    %67 = vector.load %arg6[%c32, %c0_93] : memref<36x288xf32, #tpu.memory_space<vmem>>, vector<4x288xf32>
    tpu.vector_store %arg6[%c32, %c0_93], %66 {strides = array<i32>} : memref<36x288xf32, #tpu.memory_space<vmem>>, vector<4x288xf32>,
    %c0_94 = arith.constant 0 : index
    %c0_95 = arith.constant 0 : index
    %68 = vector.load %arg2[%c0_94, %c0_95] : memref<8x36xf32, #tpu.memory_space<vmem>>, vector<8x36xf32>
    %c0_96 = arith.constant 0 : index
    %c0_97 = arith.constant 0 : index
    %69 = vector.load %arg6[%c0_96, %c0_97] : memref<36x288xf32, #tpu.memory_space<vmem>>, vector<36x288xf32>
    %cst_98 = arith.constant dense<0.000000e+00> : vector<8x288xf32>
    %70 = tpu.matmul %68, %69, %cst_98 {dimension_numbers = #tpu.dot_dimension_numbers<[1], [0], [0], [1], [0, 0, 1, 1], [], []>} : vector<8x36xf32>, vector<36x288xf32>, vector<8x288xf32> -> vector<8x288xf32>
    %c0_99 = arith.constant 0 : index
    %c0_100 = arith.constant 0 : index
    %71 = vector.load %arg3[%c0_99, %c0_100] : memref<8x1xf32, #tpu.memory_space<vmem>>, vector<8x1xf32>
    %72 = vector.broadcast %71 : vector<8x1xf32> to vector<8x288xf32>
    %73 = arith.addf %70, %72 : vector<8x288xf32>
    %c0_101 = arith.constant 0 : index
    %c0_102 = arith.constant 0 : index
    %c0_103 = arith.constant 0 : index
    %74 = vector.load %arg4[%c0_101, %c0_102, %c0_103] : memref<1x8x288xf32, #tpu.memory_space<vmem>>, vector<1x8x288xf32>
    %75 = vector.shape_cast %74 : vector<1x8x288xf32> to vector<8x288xf32>
    %76 = vector.shape_cast %73 : vector<8x288xf32> to vector<1x8x288xf32>
    tpu.vector_store %arg4[%c0_101, %c0_102, %c0_103], %76 {strides = array<i32>} : memref<1x8x288xf32, #tpu.memory_space<vmem>>, vector<1x8x288xf32>,
    return
  }
  func.func @transform_0(%arg0: i32) -> (i32, i32, i32, i32) {
    %c0_i32 = arith.constant 0 : i32
    %c0_i32_0 = arith.constant 0 : i32
    %c0_i32_1 = arith.constant 0 : i32
    %c0_i32_2 = arith.constant 0 : i32
    return %arg0, %c0_i32, %c0_i32_0, %c0_i32_1 : i32, i32, i32, i32
  }
  func.func @transform_1(%arg0: i32) -> (i32, i32) {
    %c0_i32 = arith.constant 0 : i32
    %c0_i32_0 = arith.constant 0 : i32
    %c0_i32_1 = arith.constant 0 : i32
    return %c0_i32, %c0_i32_0 : i32, i32
  }
  func.func @transform_2(%arg0: i32) -> (i32, i32) {
    %c0_i32 = arith.constant 0 : i32
    %c0_i32_0 = arith.constant 0 : i32
    %c0_i32_1 = arith.constant 0 : i32
    return %c0_i32, %c0_i32_0 : i32, i32
  }
  func.func @transform_3(%arg0: i32) -> (i32, i32, i32) {
    %c0_i32 = arith.constant 0 : i32
    %c0_i32_0 = arith.constant 0 : i32
    %c0_i32_1 = arith.constant 0 : i32
    return %arg0, %c0_i32, %c0_i32_0 : i32, i32, i32
  }
}

</mosaic_0001>

<bundles_post_ra>
// kernel: tpu_custom_call.1
= control target key start
LH: loop header
LB: loop body
LE: loop exit
PB: predicated region body
PF: predicated region fallthrough
CT: control target
= control target key end

     0   :  { %8 = vsyncpa [#allocation5], 0  ;;  %s1611_s0 = inlined_call_operand.hbm [shape: f32[2,4,16,16], index: 0, kind: input, shape index: {}]   ;;  %s1612_s1 = inlined_call_operand.vmem [shape: f32[8,36], index: 1, kind: input, shape index: {}]   ;;  %s1613_s2 = inlined_call_operand.vmem [shape: f32[8,1], index: 2, kind: input, shape index: {}]   ;;  %s1614_s3 = inlined_call_operand.hbm [shape: f32[2,8,288], index: 3, kind: output, shape index: {}]  }
   0x1   :  { %10 = vsyncpa [#allocation5 + $0x1], 0 }
   0x2   :  { %11 = vsyncpa [#allocation6], 0 }
   0x3   :  { %13 = vsyncpa [#allocation6 + $0x1], 0  ;;  %s1258_s12 = smov 0   ;;  %s1260_s13 = smov 0  }
   0x4   :  { %s1262_s14 = smov 0   ;;  %s1264_s15 = smov 0  }
   0x5 LB: > { %s1279_s16 = sadd.s32 4294967295, %s1208_s15   ;;  %s999_s17 = sadd.s32 4294967294, %s1208_s15   ;;  %s1208_s15 = sphi %s1264_s15, %s1629_s15   ;;  %s1204_s14 = sphi %s1262_s14, %s1628_s14   ;;  %s1200_s13 = sphi %s1260_s13, %s1627_s13   ;;  %s1196_s12 = sphi %s1258_s12, %s1626_s12  }
   0x6   : > { %s1283_s18 = sadd.s32 1, %s1208_s15   ;;  %s26_s19 = sadd.s32 1, %s1204_s14 }
   0x7   : > { %s23_s20 = ssub.s32 %s1208_s15, %s1283_s18  ;;  %p33_p0 = scmp.ne.s32.totalorder %s1204_s14, %s1200_s13 }
   0x8   : > { %p24_p1 = scmp.eq.s32.totalorder %s23_s20, 0  ;;  %p34_p2 = scmp.eq.s32.totalorder %s1208_s15, 0 }
   0x9   : > { %p39_p3 = scmp.ne.s32.totalorder %s1200_s13, %s1196_s12  ;;  %p40_p4 = scmp.eq.s32.totalorder %s1279_s16, 0 }
   0xa   : > { %s1295_s21 = scalar_select %p24_p1, %s1204_s14, %s26_s19  }
   0xb   : > { %p1297_p5 = por %p34_p2, %p33_p0  ;;  %p1301_p6 = por %p40_p4, %p39_p3 }
   0xc   : > { %p105_p7 = scmp.eq.s32.totalorder %s1279_s16, 1  ;;  %p111_p8 = scmp.eq.s32.totalorder %s999_s17, 1 }
   0xd   : > { %s1618_s23 = scalar_select %p1301_p6, 1, 0 }
   0xe   : > { %p1049_p10 = scmp.lt.s32.totalorder %s1208_s15, 2  ;;  %p1308_p11 = por %p105_p7, %p33_p0 }
   0xf   : > { %p1312_p12 = por %p111_p8, %p39_p3  ;;  %s137_s26 = sand.u32 1, %s1204_s14  }
  0x10   : > { %s1619_s24 = scalar_select %p1308_p11, 1, 0 }
  0x11   : > { %s1620_s25 = scalar_select %p1312_p12, 1, 0 }
  0x12   : > { %s1015_s27 = sshll.u32 %s1208_s15, 10  ;;  %s1002_s28 = sshll.u32 %s137_s26, 6 }
  0x13   : > { %s1321_s4 = scalar_lea.hbm %s1611_s0, %s1015_s27  ;;  %s141_s5 = scalar_lea.vmem [#allocation4], %s1002_s28 }
  0x14   : > { %s148_s6 = sshll.u32 %s141_s5, 4  ;;  %p1325_p13 = pnand %p1049_p10, %p1297_p5  ;;  %s1329_s6 = int_to_ptr.vmem [resolvable:$true] %s148_s6 }
  0x15   : > { %s1331_s8 = scalar_lea.sflag [#allocation5], %s137_s26  ;;  %s1116_s9 = scalar_lea.hbm %s1321_s4, 1024 }
  0x16   : > { %p1117_p0 = scmp.ne.s32.totalorder %s1321_s4, %s1116_s9  ;;  %p1118_p1 = pneg %p1325_p13 }
  0x17   : > { %s1121_s17 = scalar_lea.hbm %s1611_s0, 2048  ;;  %p1122_p4 = scmp.lt.s32.totalorder %s1321_s4, %s1611_s0 }
  0x18   : > { %p1119_p2 = pnand %p1118_p1, %p1117_p0  ;;  %p1123_p5 = scmp.lt.s32.totalorder %s1121_s17, %s1116_s9 }
  0x1a   : > { %p1120_p3 = pneg %p1119_p2  ;;  %p1124_p7 = por %p1123_p5, %p1122_p4 }
  0x1c   : > { %p1125_p8 = pnand %p1124_p7, %p1120_p3 }
  0x1e   : > { %1128 = shalt.err (!%p1125_p8)
}
  0x1f   : > { %s1129_s22 = scalar_lea.vmem %s1329_s6, 1024  ;;  %s1210_s26 = smov [#allocation4]  }
  0x20   : > { %p1130_p10 = scmp.ne.s32.totalorder %s1329_s6, %s1129_s22  ;;  %s1134_s27 = sshll.u32 %s1210_s26, 4  ;;  %s1135_s27 = int_to_ptr.vmem [resolvable:$false] %s1134_s27 }
  0x21   : > { %s1136_s28 = scalar_lea.vmem %s1135_s27, 2048  ;;  %p1137_p2 = scmp.lt.s32.totalorder %s1329_s6, %s1135_s27 }
  0x22   : > { %p1132_p9 = pnand %p1130_p10, %p1118_p1  ;;  %p1138_p12 = scmp.lt.s32.totalorder %s1136_s28, %s1129_s22 }
  0x24   : > { %p1133_p0 = pneg %p1132_p9  ;;  %p1139_p11 = por %p1138_p12, %p1137_p2 }
  0x26   : > { %p1140_p6 = pnand %p1139_p11, %p1133_p0 }
  0x28   : > { %1143 = shalt.err (!%p1140_p6)
}
  0x29   : > { %s1211_s29 = smov 128   ;;  %s1212_s30 = smov 8  }
  0x2a   : > { %1044 = dma.hbm_to_vmem [thread:$0]  (!%p1325_p13), %s1321_s4, 1024, %s1329_s6, %s1331_s8, %s1211_s29, %s1211_s29, %s1212_s30  }
  0x2b   : > { %p1005_p9 = scmp.ge.s32.totalorder %s1208_s15, 1  ;;  %p156_p1 = scmp.lt.s32.totalorder %s1208_s15, 3 }
  0x2d   : > { %p157_p3 = pnand %p1005_p9, %p156_p1 }
  0x2e   : > { %s1355_s5 = sand.u32 (!%p157_p3), 1, %s1200_s13   ;;  %p1622_p6 = scmp.ne.s32.totalorder (!%p157_p3), %s1618_s23, 0 }
  0x2f   : > { %160 = sbr.rel (%p157_p3) target bundleno = 596 (0x254), region = 32  ;;  %s1006_s9 = sshll.u32 (!%p157_p3), %s1355_s5, 6 }
  0x30   : > { %s163_s10 = scalar_lea.sflag (!%p157_p3), [#allocation5], %s1355_s5  ;;  %s1359_s11 = scalar_lea.vmem (!%p157_p3), [#allocation4], %s1006_s9 }
  0x34   : > { %1187 = dma.done.wait (%p1622_p6), %s163_s10, 1024  }
  0x35   : > { %1189 = vsyncadd (%p1622_p6), %s163_s10, 4294966272  ;;  %v1213_v0 = vmov 0.0   ;;  %vm201_vm0 = vcmask 1041409   ;;  %vm203_vm1 = vcmask 1045509   ;;  %vm206_vm2 = vcmask 1042434   ;;  %s1214_s23 = smov 55  }
  0x36   : > { %189 = vst [vmem:[#allocation2] sm:$0xff] %v1213_v0  ;;  %1022 = vmatprep.subr.mxu1 %v1213_v0  ;;  %833 = vmatprep.mubr.f32.mxu0 %v1213_v0  ;;  %vm208_vm3 = vcmask 1046534   ;;  %v242_v1 = vld [vmem:[%s1359_s11 + $0x2] sm:$0x1]  ;;  %v243_v2 = vld [vmem:[%s1359_s11 + $0x12] sm:$0x1] }
  0x37   : > { %v244_v3 = vld [vmem:[%s1359_s11 + $0x22] sm:$0x1]  ;;  %v245_v4 = vld [vmem:[%s1359_s11 + $0x32] sm:$0x1]  ;;  %v250_v5 = vrot.slane %v243_v2, 7  ;;  %vm211_vm4 = vcmask 1043459  }
  0x38   : > { %v253_v6 = vrot.slane %v244_v3, 6  ;;  %v192_v7 = vld [vmem:[%s1359_s11] sm:$0x1]  ;;  %v256_v8 = vrot.slane %v245_v4, 5  ;;  %v193_v9 = vld [vmem:[%s1359_s11 + $0x10] sm:$0x1] }
  0x39   : > { %v194_v10 = vld [vmem:[%s1359_s11 + $0x20] sm:$0x1]  ;;  %v251_v11 = vsel %vm201_vm0, %v250_v5, %v242_v1  ;;  %v195_v12 = vld [vmem:[%s1359_s11 + $0x30] sm:$0x1]  ;;  %v200_v13 = vrot.slane %v193_v9, 7  ;;  %vm213_vm5 = vcmask 1047559  }
  0x3a   : > { %v205_v14 = vrot.slane %v194_v10, 6  ;;  %v264_v15 = vld [vmem:[%s1359_s11 + $0x3] sm:$0x1]  ;;  %v252_v16 = vsel %vm203_vm1, %v250_v5, %v251_v11  ;;  %v210_v17 = vrot.slane %v195_v12, 5  ;;  %v265_v18 = vld [vmem:[%s1359_s11 + $0x13] sm:$0x1] }
  0x3b   : > { %v266_v19 = vld [vmem:[%s1359_s11 + $0x23] sm:$0x1]  ;;  %v254_v20 = vsel %vm206_vm2, %v253_v6, %v252_v16  ;;  %v202_v21 = vsel %vm201_vm0, %v200_v13, %v192_v7  ;;  %v267_v22 = vld [vmem:[%s1359_s11 + $0x33] sm:$0x1]  ;;  %v272_v23 = vrot.slane %v265_v18, 7  ;;  %s1215_s4 = smov 19  }
  0x3c   : > { %v275_v24 = vrot.slane %v266_v19, 6  ;;  %v220_v25 = vld [vmem:[%s1359_s11 + $0x1] sm:$0x1]  ;;  %v255_v26 = vsel %vm208_vm3, %v253_v6, %v254_v20  ;;  %v204_v27 = vsel %vm203_vm1, %v200_v13, %v202_v21  ;;  %v278_v28 = vrot.slane %v267_v22, 5  ;;  %v221_v29 = vld [vmem:[%s1359_s11 + $0x11] sm:$0x1] }
  0x3d   : > { %v222_v30 = vld [vmem:[%s1359_s11 + $0x21] sm:$0x1]  ;;  %v257_v31 = vsel %vm211_vm4, %v256_v8, %v255_v26  ;;  %v207_v32 = vsel %vm206_vm2, %v205_v14, %v204_v27  ;;  %v273_v33 = vsel %vm201_vm0, %v272_v23, %v264_v15  ;;  %v223_v34 = vld [vmem:[%s1359_s11 + $0x31] sm:$0x1]  ;;  %v228_v35 = vrot.slane %v221_v29, 7  ;;  %s1216_s6 = smov 73  }
  0x3e   : > { %v258_v36 = vsel %vm213_vm5, %v256_v8, %v257_v31  ;;  %v209_v37 = vsel %vm208_vm3, %v205_v14, %v207_v32  ;;  %v274_v38 = vsel %vm203_vm1, %v272_v23, %v273_v33  ;;  %v231_v39 = vrot.slane %v222_v30, 6  ;;  %v287_v40 = vld [vmem:[%s1359_s11 + $0x14] sm:$0x1]  ;;  %v288_v41 = vld [vmem:[%s1359_s11 + $0x24] sm:$0x1]  ;;  %s1217_s7 = smov 37  }
  0x3f   : > { %259 = vrot.lane.b32.xlu1 %v258_v36, %s1214_s23  ;;  %v212_v42 = vsel %vm211_vm4, %v210_v17, %v209_v37  ;;  %v276_v43 = vsel %vm206_vm2, %v275_v24, %v274_v38  ;;  %v229_v44 = vsel %vm201_vm0, %v228_v35, %v220_v25  ;;  %v234_v45 = vrot.slane %v223_v34, 5  ;;  %v286_v46 = vld [vmem:[%s1359_s11 + $0x4] sm:$0x1]  ;;  %v289_v47 = vld [vmem:[%s1359_s11 + $0x34] sm:$0x1]  ;;  %s1218_s8 = smov 91  }
  0x40   : > { %v214_v48 = vsel %vm213_vm5, %v210_v17, %v212_v42  ;;  %v277_v49 = vsel %vm208_vm3, %v275_v24, %v276_v43  ;;  %v230_v50 = vsel %vm203_vm1, %v228_v35, %v229_v44  ;;  %v294_v51 = vrot.slane %v287_v40, 7  ;;  %v331_v52 = vld [vmem:[%s1359_s11 + $0x16] sm:$0x1]  ;;  %v332_v53 = vld [vmem:[%s1359_s11 + $0x26] sm:$0x1]  ;;  %s1219_s17 = smov 127  }
  0x41   : > { %215 = vrot.lane.b32.xlu0 %v214_v48, %s1215_s4  ;;  %v279_v54 = vsel %vm211_vm4, %v278_v28, %v277_v49  ;;  %v232_v55 = vsel %vm206_vm2, %v231_v39, %v230_v50  ;;  %v297_v56 = vrot.slane %v288_v41, 6  ;;  %v300_v57 = vrot.slane %v289_v47, 5  ;;  %v330_v58 = vld [vmem:[%s1359_s11 + $0x6] sm:$0x1]  ;;  %v333_v59 = vld [vmem:[%s1359_s11 + $0x36] sm:$0x1] }
  0x42   : > { %v280_v60 = vsel %vm213_vm5, %v278_v28, %v279_v54  ;;  %v233_v61 = vsel %vm208_vm3, %v231_v39, %v232_v55  ;;  %v295_v62 = vsel %vm201_vm0, %v294_v51, %v286_v46  ;;  %v338_v63 = vrot.slane %v331_v52, 7  ;;  %v358_v1 = vld [vmem:[%s1359_s11 + $0x17] sm:$0x1]  ;;  %v359_v2 = vld [vmem:[%s1359_s11 + $0x27] sm:$0x1]  ;;  %s1220_s19 = smov 17  }
  0x43   : > { %281 = vrot.lane.b32.xlu1 %v280_v60, %s1216_s6  ;;  %v235_v3 = vsel %vm211_vm4, %v234_v45, %v233_v61  ;;  %v296_v4 = vsel %vm203_vm1, %v294_v51, %v295_v62  ;;  %v341_v5 = vrot.slane %v332_v53, 6  ;;  %v344_v6 = vrot.slane %v333_v59, 5  ;;  %v357_v7 = vld [vmem:[%s1359_s11 + $0x7] sm:$0x1]  ;;  %v360_v8 = vld [vmem:[%s1359_s11 + $0x37] sm:$0x1] }
  0x44   : > { %v236_v9 = vsel %vm213_vm5, %v234_v45, %v235_v3  ;;  %v298_v10 = vsel %vm206_vm2, %v297_v56, %v296_v4  ;;  %v339_v11 = vsel %vm201_vm0, %v338_v63, %v330_v58  ;;  %v365_v12 = vrot.slane %v358_v1, 7  ;;  %v309_v13 = vld [vmem:[%s1359_s11 + $0x15] sm:$0x1]  ;;  %v310_v14 = vld [vmem:[%s1359_s11 + $0x25] sm:$0x1]  ;;  %s1221_s20 = smov 109  }
  0x45   : > { %237 = vrot.lane.b32.xlu0 %v236_v9, %s1217_s7  ;;  %v299_v15 = vsel %vm208_vm3, %v297_v56, %v298_v10  ;;  %v340_v16 = vsel %vm203_vm1, %v338_v63, %v339_v11  ;;  %v368_v17 = vrot.slane %v359_v2, 6  ;;  %v371_v18 = vrot.slane %v360_v8, 5  ;;  %v308_v19 = vld [vmem:[%s1359_s11 + $0x5] sm:$0x1]  ;;  %v311_v20 = vld [vmem:[%s1359_s11 + $0x35] sm:$0x1] }
  0x46   : > { %v301_v21 = vsel %vm211_vm4, %v300_v57, %v299_v15  ;;  %v342_v22 = vsel %vm206_vm2, %v341_v5, %v340_v16  ;;  %v366_v23 = vsel %vm201_vm0, %v365_v12, %v357_v7  ;;  %v316_v24 = vrot.slane %v309_v13, 7  ;;  %v402_v25 = vld [vmem:[%s1359_s11 + $0x19] sm:$0x1]  ;;  %v403_v30 = vld [vmem:[%s1359_s11 + $0x29] sm:$0x1]  ;;  %s1222_s22 = smov 53  }
  0x47   : > { %v302_v26 = vsel %vm213_vm5, %v300_v57, %v301_v21  ;;  %v343_v27 = vsel %vm208_vm3, %v341_v5, %v342_v22  ;;  %v367_v28 = vsel %vm203_vm1, %v365_v12, %v366_v23  ;;  %v319_v29 = vrot.slane %v310_v14, 6  ;;  %v404_v31 = vld [vmem:[%s1359_s11 + $0x39] sm:$0x1]  ;;  %v401_v36 = vld [vmem:[%s1359_s11 + $0x9] sm:$0x1]  ;;  %s1223_s26 = smov 35  }
  0x48   : > { %303 = vrot.lane.b32.xlu1 %v302_v26, %s1218_s8  ;;  %v345_v32 = vsel %vm211_vm4, %v344_v6, %v343_v27  ;;  %v369_v33 = vsel %vm206_vm2, %v368_v17, %v367_v28  ;;  %v317_v34 = vsel %vm201_vm0, %v316_v24, %v308_v19  ;;  %v322_v35 = vrot.slane %v311_v20, 5  ;;  %v380_v37 = vld [vmem:[%s1359_s11 + $0x18] sm:$0x1]  ;;  %v381_v42 = vld [vmem:[%s1359_s11 + $0x28] sm:$0x1]  ;;  %s1224_s27 = smov 125  }
  0x49   : > { %v346_v38 = vsel %vm213_vm5, %v344_v6, %v345_v32  ;;  %v370_v39 = vsel %vm208_vm3, %v368_v17, %v369_v33  ;;  %v318_v40 = vsel %vm203_vm1, %v316_v24, %v317_v34  ;;  %v409_v41 = vrot.slane %v402_v25, 7  ;;  %v382_v43 = vld [vmem:[%s1359_s11 + $0x38] sm:$0x1]  ;;  %v379_v48 = vld [vmem:[%s1359_s11 + $0x8] sm:$0x1]  ;;  %s1225_s28 = smov 71  }
  0x4a   : > { %347 = vrot.lane.b32.xlu0 %v346_v38, %s1219_s17  ;;  %v372_v44 = vsel %vm211_vm4, %v371_v18, %v370_v39  ;;  %v320_v45 = vsel %vm206_vm2, %v319_v29, %v318_v40  ;;  %v412_v46 = vrot.slane %v403_v30, 6  ;;  %v415_v47 = vrot.slane %v404_v31, 5  ;;  %v490_v49 = vld [vmem:[%s1359_s11 + $0x1d] sm:$0x1]  ;;  %v491_v54 = vld [vmem:[%s1359_s11 + $0x2d] sm:$0x1] }
  0x4b   : > { %v373_v50 = vsel %vm213_vm5, %v371_v18, %v372_v44  ;;  %v321_v51 = vsel %vm208_vm3, %v319_v29, %v320_v45  ;;  %v410_v52 = vsel %vm201_vm0, %v409_v41, %v401_v36  ;;  %v387_v53 = vrot.slane %v380_v37, 7  ;;  %v492_v55 = vld [vmem:[%s1359_s11 + $0x3d] sm:$0x1]  ;;  %v489_v60 = vld [vmem:[%s1359_s11 + $0xd] sm:$0x1]  ;;  %s1226_s29 = smov 89  }
  0x4c   : > { %374 = vrot.lane.b32.xlu1 %v373_v50, %s1220_s19  ;;  %v323_v56 = vsel %vm211_vm4, %v322_v35, %v321_v51  ;;  %v411_v57 = vsel %vm203_vm1, %v409_v41, %v410_v52  ;;  %v390_v58 = vrot.slane %v381_v42, 6  ;;  %v393_v59 = vrot.slane %v382_v43, 5  ;;  %v424_v61 = vld [vmem:[%s1359_s11 + $0x1a] sm:$0x1]  ;;  %v425_v3 = vld [vmem:[%s1359_s11 + $0x2a] sm:$0x1] }
  0x4d   : > { %v324_v62 = vsel %vm213_vm5, %v322_v35, %v323_v56  ;;  %v413_v63 = vsel %vm206_vm2, %v412_v46, %v411_v57  ;;  %v388_v1 = vsel %vm201_vm0, %v387_v53, %v379_v48  ;;  %v497_v2 = vrot.slane %v490_v49, 7  ;;  %v423_v8 = vld [vmem:[%s1359_s11 + $0xa] sm:$0x1]  ;;  %v426_v9 = vld [vmem:[%s1359_s11 + $0x3a] sm:$0x1]  ;;  %s1227_s30 = smov 107  }
  0x4e   : > { %325 = vrot.lane.b32.xlu0 %v324_v62, %s1221_s20  ;;  %v414_v4 = vsel %vm208_vm3, %v412_v46, %v413_v63  ;;  %v389_v5 = vsel %vm203_vm1, %v387_v53, %v388_v1  ;;  %v500_v6 = vrot.slane %v491_v54, 6  ;;  %v503_v7 = vrot.slane %v492_v55, 5  ;;  %v446_v14 = vld [vmem:[%s1359_s11 + $0x1b] sm:$0x1]  ;;  %v447_v19 = vld [vmem:[%s1359_s11 + $0x2b] sm:$0x1] }
  0x4f   : > { %v416_v10 = vsel %vm211_vm4, %v415_v47, %v414_v4  ;;  %v391_v11 = vsel %vm206_vm2, %v390_v58, %v389_v5  ;;  %v498_v12 = vsel %vm201_vm0, %v497_v2, %v489_v60  ;;  %v431_v13 = vrot.slane %v424_v61, 7  ;;  %v448_v20 = vld [vmem:[%s1359_s11 + $0x3b] sm:$0x1]  ;;  %v445_v25 = vld [vmem:[%s1359_s11 + $0xb] sm:$0x1]  ;;  %s1228_s9 = smov 15  }
  0x50   : > { %v417_v15 = vsel %vm213_vm5, %v415_v47, %v416_v10  ;;  %v392_v16 = vsel %vm208_vm3, %v390_v58, %v391_v11  ;;  %v499_v17 = vsel %vm203_vm1, %v497_v2, %v498_v12  ;;  %v434_v18 = vrot.slane %v425_v3, 6  ;;  %v468_v26 = vld [vmem:[%s1359_s11 + $0x1c] sm:$0x1]  ;;  %v469_v31 = vld [vmem:[%s1359_s11 + $0x2c] sm:$0x1]  ;;  %s1229_s10 = smov 33  }
  0x51   : > { %418 = vrot.lane.b32.xlu1 %v417_v15, %s1222_s22  ;;  %v394_v21 = vsel %vm211_vm4, %v393_v59, %v392_v16  ;;  %v501_v22 = vsel %vm206_vm2, %v500_v6, %v499_v17  ;;  %v432_v23 = vsel %vm201_vm0, %v431_v13, %v423_v8  ;;  %v437_v24 = vrot.slane %v426_v9, 5  ;;  %v470_v32 = vld [vmem:[%s1359_s11 + $0x3c] sm:$0x1]  ;;  %v467_v37 = vld [vmem:[%s1359_s11 + $0xc] sm:$0x1]  ;;  %s1231_s23 = smov 92  }
  0x52   : > { %v395_v27 = vsel %vm213_vm5, %v393_v59, %v394_v21  ;;  %v502_v28 = vsel %vm208_vm3, %v500_v6, %v501_v22  ;;  %v433_v29 = vsel %vm203_vm1, %v431_v13, %v432_v23  ;;  %v453_v30 = vrot.slane %v446_v14, 7  ;;  %v517_v38 = vld [vmem:[%s1359_s11 + $0x1e] sm:$0x1]  ;;  %v518_v43 = vld [vmem:[%s1359_s11 + $0x2e] sm:$0x1]  ;;  %s1232_s4 = smov 108  }
  0x53   : > { %396 = vrot.lane.b32.xlu0 %v395_v27, %s1223_s26  ;;  %v504_v33 = vsel %vm211_vm4, %v503_v7, %v502_v28  ;;  %v435_v34 = vsel %vm206_vm2, %v434_v18, %v433_v29  ;;  %v456_v35 = vrot.slane %v447_v19, 6  ;;  %v459_v36 = vrot.slane %v448_v20, 5  ;;  %v519_v44 = vld [vmem:[%s1359_s11 + $0x3e] sm:$0x1]  ;;  %v516_v49 = vld [vmem:[%s1359_s11 + $0xe] sm:$0x1] }
  0x54   : > { %v505_v39 = vsel %vm213_vm5, %v503_v7, %v504_v33  ;;  %v436_v40 = vsel %vm208_vm3, %v434_v18, %v435_v34  ;;  %v454_v41 = vsel %vm201_vm0, %v453_v30, %v445_v25  ;;  %v475_v42 = vrot.slane %v468_v26, 7  ;;  %v539_v50 = vld [vmem:[%s1359_s11 + $0x1f] sm:$0x1]  ;;  %v540_v55 = vld [vmem:[%s1359_s11 + $0x2f] sm:$0x1]  ;;  %s1233_s6 = smov 110  }
  0x55   : > { %506 = vrot.lane.b32.xlu1 %v505_v39, %s1224_s27  ;;  %v438_v45 = vsel %vm211_vm4, %v437_v24, %v436_v40  ;;  %v455_v46 = vsel %vm203_vm1, %v453_v30, %v454_v41  ;;  %v478_v47 = vrot.slane %v469_v31, 6  ;;  %v481_v48 = vrot.slane %v470_v32, 5  ;;  %v538_v60 = vld [vmem:[%s1359_s11 + $0xf] sm:$0x1]  ;;  %v541_v61 = vld [vmem:[%s1359_s11 + $0x3f] sm:$0x1] }
  0x56   : > { %v439_v51 = vsel %vm213_vm5, %v437_v24, %v438_v45  ;;  %v457_v52 = vsel %vm206_vm2, %v456_v35, %v455_v46  ;;  %v476_v53 = vsel %vm201_vm0, %v475_v42, %v467_v37  ;;  %v524_v54 = vrot.slane %v517_v38, 7  ;;  %s1230_s11 = smov 90   ;;  %s1234_s7 = smov 126  }
  0x57   : > { %440 = vrot.lane.b32.xlu0 %v439_v51, %s1225_s28  ;;  %v458_v56 = vsel %vm208_vm3, %v456_v35, %v457_v52  ;;  %v477_v57 = vsel %vm203_vm1, %v475_v42, %v476_v53  ;;  %v527_v58 = vrot.slane %v518_v43, 6  ;;  %v530_v59 = vrot.slane %v519_v44, 5  ;;  %v749_v53 = vld [vmem:[%s1613_s2] sm:$0xff]  ;;  %s1036_s26 = smul.u32 384, %s1279_s16  ;;  %p1623_p12 = scmp.ne.s32.totalorder %s1619_s24, 0 }
  0x58   : > { %v460_v62 = vsel %vm211_vm4, %v459_v36, %v458_v56  ;;  %v479_v63 = vsel %vm206_vm2, %v478_v47, %v477_v57  ;;  %v525_v1 = vsel %vm201_vm0, %v524_v54, %v516_v49  ;;  %v546_v2 = vrot.slane %v539_v50, 7  ;;  %s1237_s16 = smov [#allocation7]  }
  0x59   : > { %v461_v3 = vsel %vm213_vm5, %v459_v36, %v460_v62  ;;  %v480_v4 = vsel %vm208_vm3, %v478_v47, %v479_v63  ;;  %v526_v5 = vsel %vm203_vm1, %v524_v54, %v525_v1  ;;  %v549_v6 = vrot.slane %v540_v55, 6 }
  0x5a   : > { %v482_v7 = vsel %vm211_vm4, %v481_v48, %v480_v4  ;;  %v528_v8 = vsel %vm206_vm2, %v527_v58, %v526_v5  ;;  %v547_v9 = vsel %vm201_vm0, %v546_v2, %v538_v60  ;;  %v552_v10 = vrot.slane %v541_v61, 5 }
  0x5b   : > { %462 = vrot.lane.b32.xlu0 %v461_v3, %s1226_s29  ;;  %v483_v11 = vsel %vm213_vm5, %v481_v48, %v482_v7  ;;  %v529_v12 = vsel %vm208_vm3, %v527_v58, %v528_v8  ;;  %v548_v13 = vsel %vm203_vm1, %v546_v2, %v547_v9  ;;  %vm190_vm6 = vcmask 576512  }
  0x5c   : > { %484 = vrot.lane.b32.xlu1 %v483_v11, %s1227_s30  ;;  %v531_v14 = vsel %vm211_vm4, %v530_v59, %v529_v12  ;;  %v550_v15 = vsel %vm206_vm2, %v549_v6, %v548_v13  ;;  %191 = vst.msk [vmem:[#allocation2 + $0x8] sm:$0xf] %vm190_vm6, %v1213_v0  ;;  %vm218_vm7 = vcmask 281752   ;;  %vm240_vm8 = vcmask 429352  }
  0x5d   : > { %v532_v16 = vsel %vm213_vm5, %v530_v59, %v531_v14  ;;  %v551_v17 = vsel %vm208_vm3, %v549_v6, %v550_v15  ;;  %vm262_vm9 = vcmask 576952   ;;  %vm284_vm10 = vcmask 724552  }
  0x5e   : > { %v553_v18 = vsel %vm211_vm4, %v552_v10, %v551_v17  ;;  %vm306_vm11 = vcmask 872152   ;;  %vm353_vm12 = vcmask 1044472   ;;  %vm354_vm13 = vcmask 121860  }
  0x5f   : > { %533 = vrot.lane.b32.xlu0 %v532_v16, %s1228_s9  ;;  %v554_v19 = vsel %vm213_vm5, %v552_v10, %v553_v18  ;;  %vm350_vm14 = vcmask 1039360   ;;  %vm328_vm15 = vcmask 1019752   ;;  %vm355_vm0 = vmor %vm354_vm13, %vm353_vm12  ;;  %vm377_vm1 = vcmask 265352   ;;  %s927_s9 = scalar_lea.hbm %s1614_s3, %s1036_s26 }
  0x60   : > { %555 = vrot.lane.b32.xlu1 %v554_v19, %s1229_s10  ;;  %vm399_vm2 = vcmask 412952   ;;  %vm421_vm3 = vcmask 560552   ;;  %vm443_vm4 = vcmask 708152   ;;  %vm512_vm5 = vcmask 1044456   ;;  %s915_s10 = scalar_lea.sflag [#allocation6], %s1355_s5 }
  0x61   : > { %vm513_vm6 = vcmask 105476   ;;  %vm558_vm12 = vcmask 396552   ;;  %vm567_vm13 = vcmask 257024   ;;  %v1236_v52 = vmov 0  }
  0x62   : > { %1109 = vset.pattern.permute.xlu0 %v1236_v52 }
  0xb1   : > { %v260_v20 = vpop.permute.xlu1 %259 }
  0xb3   : > { %v216_v21 = vpop.permute.xlu0 %215 }
  0xb4   : > { %219 = vst.msk [vmem:[#allocation2] sm:$0xf] %vm218_vm7, %v216_v21  ;;  %vm465_vm7 = vcmask 855752  }
  0xb5   : > { %v282_v22 = vpop.permute.xlu1 %281 }
  0xb7   : > { %v238_v23 = vpop.permute.xlu0 %237 }
  0xb8   : > { %241 = vst.msk [vmem:[#allocation2] sm:$0xf] %vm240_vm8, %v238_v23  ;;  %vm509_vm8 = vcmask 1022976  }
  0xb9   : > { %263 = vst.msk [vmem:[#allocation2] sm:$0xf] %vm262_vm9, %v260_v20  ;;  %vm487_vm9 = vcmask 1003352  }
  0xba   : > { %v304_v24 = vpop.permute.xlu1 %303  ;;  %285 = vst.msk [vmem:[#allocation2] sm:$0xf] %vm284_vm10, %v282_v22  ;;  %vm514_vm10 = vmor %vm513_vm6, %vm512_vm5  ;;  %vm588_vm5 = vcmask 261124   ;;  %vm642_vm6 = vcmask 891904  }
  0xbb   : > { %307 = vst.msk [vmem:[#allocation2] sm:$0xf] %vm306_vm11, %v304_v24  ;;  %vm536_vm11 = vcmask 248952  }
  0xbc   : > { %v348_v25 = vpop.permute.xlu0 %347 }
  0xbd   : > { %v349_v26 = vrot.slane %v348_v25, 4 }
  0xbe   : > { %v375_v27 = vpop.permute.xlu1 %374 }
  0xbf   : > { %v351_v29 = vsel %vm350_vm14, %v349_v26, %v348_v25 }
  0xc0   : > { %v326_v28 = vpop.permute.xlu0 %325 }
  0xc1   : > { %329 = vst.msk [vmem:[#allocation2] sm:$0xf] %vm328_vm15, %v326_v28  ;;  %vm1235_vm15 = vmmov 0  }
  0xc2   : > { %356 = vst.msk [vmem:[#allocation2] sm:$0xff] %vm355_vm0, %v351_v29  ;;  %1032 = vmatprep.mubr.msk.f32.mxu1 %vm1235_vm15, %v1213_v0  ;;  %vm724_vm0 = vcmask 736256  }
  0xc3   : > { %v419_v30 = vpop.permute.xlu1 %418  ;;  %378 = vst.msk [vmem:[#allocation2 + $0x4] sm:$0xf] %vm377_vm1, %v375_v27  ;;  %vm704_vm1 = vcmask 744448  }
  0xc5   : > { %v397_v31 = vpop.permute.xlu0 %396 }
  0xc6   : > { %400 = vst.msk [vmem:[#allocation2 + $0x4] sm:$0xf] %vm399_vm2, %v397_v31  ;;  %vm663_vm2 = vcmask 883712  }
  0xc7   : > { %422 = vst.msk [vmem:[#allocation2 + $0x4] sm:$0xf] %vm421_vm3, %v419_v30  ;;  %v507_v32 = vpop.permute.xlu1 %506  ;;  %vm622_vm3 = vcmask 900096  }
  0xc8   : > { %v508_v34 = vrot.slane %v507_v32, 4 }
  0xc9   : > { %v441_v33 = vpop.permute.xlu0 %440 }
  0xca   : > { %444 = vst.msk [vmem:[#allocation2 + $0x4] sm:$0xf] %vm443_vm4, %v441_v33  ;;  %v510_v37 = vsel %vm509_vm8, %v508_v34, %v507_v32  ;;  %vm683_vm4 = vcmask 752640   ;;  %vm601_vm8 = vcmask 1031168  }
  0xcd   : > { %v463_v35 = vpop.permute.xlu0 %462 }
  0xce   : > { %466 = vst.msk [vmem:[#allocation2 + $0x4] sm:$0xf] %vm465_vm7, %v463_v35  ;;  %v485_v36 = vpop.permute.xlu1 %484  ;;  %vm759_vm7 = vcmask 1043456  }
  0xcf   : > { %488 = vst.msk [vmem:[#allocation2 + $0x4] sm:$0xf] %vm487_vm9, %v485_v36  ;;  %vm912_vm9 = vcmask 261120  }
  0xd0   : > { %515 = vst.msk [vmem:[#allocation2 + $0x4] sm:$0xff] %vm514_vm10, %v510_v37 }
  0xd1   : > { %v534_v38 = vpop.permute.xlu0 %533 }
  0xd2   : > { %537 = vst.msk [vmem:[#allocation2 + $0x8] sm:$0xf] %vm536_vm11, %v534_v38  ;;  %v556_v39 = vpop.permute.xlu1 %555 }
  0xd3   : > { %559 = vst.msk [vmem:[#allocation2 + $0x8] sm:$0xf] %vm558_vm12, %v556_v39 }
  0xd7   : > { %v713_v40 = vld [vmem:[#allocation2] sm:$0xff] }
  0xd8   : > { %718 = vrot.lane.b32.xlu0 %v713_v40, %s1230_s11  ;;  %v717_v41 = vcombine.high %v713_v40, %v713_v40  ;;  %700 = vrot.lane.b32.xlu1 %v713_v40, %s1218_s8  ;;  %565 = vst [vmem:[#allocation3] sm:$0xf] %v713_v40  ;;  %v696_v44 = vcombine.low %v713_v40, %v713_v40 }
  0xda   : > { %566 = vst [vmem:[#allocation3 + $0x8] sm:$0xf] %v717_v41  ;;  %v673_v42 = vld [vmem:[#allocation2 + $0x8] sm:$0xf] }
  0xdb   : > { %v561_v43 = vld [vmem:[#allocation2 + $0x8] sm:$0xf] }
  0xdc   : > { %720 = vrot.lane.b32.xlu0 %v717_v41, %s1230_s11  ;;  %677 = vrot.lane.b32.xlu1 %v713_v40, %s1231_s23  ;;  %568 = vst.msk [vmem:[#allocation3 + $0x10] sm:$0xf] %vm567_vm13, %v561_v43  ;;  %v632_v45 = vld [vmem:[#allocation2 + $0x8] sm:$0xf]  ;;  %v733_v43 = vld [vmem:[%s1612_s1] sm:$0xff] }
  0xdd   : > { %v591_v46 = vld [vmem:[#allocation2 + $0x8] sm:$0xf] }
  0xde   : > { %v714_v47 = vld [vmem:[#allocation2 + $0x8] sm:$0xf] }
  0xdf   : > { %v1112_v48 = vld [vmem:[#allocation2 + $0x8] ss:$0 sps:$4 sm:$0xff]  }
  0xe0   : > { %659 = vrot.lane.b32.xlu1 %v713_v40, %s1232_s4  ;;  %681 = vrot.lane.b32.xlu0 %v673_v42, %s1231_s23  ;;  %v1113_v49 = vld [vmem:[#allocation2 + $0x8] ss:$0 sps:$4 sm:$0xff]  }
  0xe1   : > { %v1114_v50 = vld [vmem:[#allocation2 + $0x8] ss:$0 sps:$4 sm:$0xff]  }
  0xe2   : > { %v1115_v51 = vld [vmem:[#allocation2 + $0x8] ss:$0 sps:$4 sm:$0xff]  }
  0xe4   : > { %636 = vrot.lane.b32.xlu1 %v713_v40, %s1221_s20  ;;  %698 = vrot.lane.b32.xlu0 %v696_v44, %s1218_s8 }
  0xe8   : > { %618 = vrot.lane.b32.xlu1 %v713_v40, %s1233_s6  ;;  %640 = vrot.lane.b32.xlu0 %v632_v45, %s1221_s20 }
  0xec   : > { %595 = vrot.lane.b32.xlu1 %v713_v40, %s1234_s7  ;;  %657 = vrot.lane.b32.xlu0 %v696_v44, %s1232_s4 }
  0xf0   : > { %577 = vrot.lane.b32.xlu1 %v713_v40, %s1219_s17  ;;  %599 = vrot.lane.b32.xlu0 %v591_v46, %s1234_s7 }
  0xf4   : > { %722 = vrot.lane.b32.xlu1 %v714_v47, %s1230_s11  ;;  %616 = vrot.lane.b32.xlu0 %v696_v44, %s1233_s6 }
  0xf8   : > { %679 = vrot.lane.b32.xlu1 %v717_v41, %s1231_s23  ;;  %702 = vrot.lane.b32.xlu0 %v1112_v48, %s1218_s8  ;;  %s1148_s23 = sshll.u32 %s1237_s16, 4  ;;  %s1149_s23 = int_to_ptr.vmem [resolvable:$false] %s1148_s23 }
  0xfc   : > { %638 = vrot.lane.b32.xlu1 %v717_v41, %s1221_s20  ;;  %661 = vrot.lane.b32.xlu0 %v1113_v49, %s1232_s4  ;;  %s1035_s20 = smul.u32 24, %s1355_s5  ;;  %s1150_s4 = scalar_lea.vmem %s1149_s23, 768 }
  0xfe   : > { %s188_s27 = scalar_lea.vmem [#allocation7], %s1035_s20 }
  0xff   : > { %s929_s28 = sshll.u32 %s188_s27, 4  ;;  %s930_s28 = int_to_ptr.vmem [resolvable:$true] %s929_s28 }
 0x100   : > { %597 = vrot.lane.b32.xlu1 %v717_v41, %s1234_s7  ;;  %620 = vrot.lane.b32.xlu0 %v1114_v50, %s1233_s6  ;;  %s1144_s11 = scalar_lea.vmem %s930_s28, 384  ;;  %p1151_p5 = scmp.lt.s32.totalorder %s930_s28, %s1149_s23 }
 0x101   : > { %p1145_p11 = scmp.ne.s32.totalorder %s930_s28, %s1144_s11  ;;  %p1152_p7 = scmp.lt.s32.totalorder %s1150_s4, %s1144_s11 }
 0x103   : > { %p1146_p13 = pnand %p1145_p11, %p1623_p12  ;;  %p1153_p8 = por %p1152_p7, %p1151_p5 }
 0x104   : > { %575 = vrot.lane.b32.xlu1 %v696_v44, %s1219_s17  ;;  %579 = vrot.lane.b32.xlu0 %v1115_v51, %s1219_s17 }
 0x105   : > { %p1147_p4 = pneg %p1146_p13 }
 0x107   : > { %p1154_p10 = pnand %p1153_p8, %p1147_p4 }
 0x108   : > { %752 = vperm.xlu0 %1109, %v749_v53  }
 0x14a   : > { %v719_v54 = vpop.permute.xlu0 %718  ;;  %v701_v55 = vpop.permute.xlu1 %700 }
 0x14e   : > { %v721_v56 = vpop.permute.xlu0 %720  ;;  %v678_v57 = vpop.permute.xlu1 %677 }
 0x14f   : > { %v725_v58 = vsel %vm724_vm0, %v719_v54, %v721_v56 }
 0x150   : > { %730 = vst [vmem:[#allocation3 + $0x60] sm:$0xf] %v725_v58 }
 0x152   : > { %v660_v59 = vpop.permute.xlu1 %659  ;;  %v682_v60 = vpop.permute.xlu0 %681 }
 0x153   : > { %691 = vst.msk [vmem:[#allocation3 + $0x58] sm:$0xf] %vm567_vm13, %v682_v60 }
 0x156   : > { %v637_v61 = vpop.permute.xlu1 %636  ;;  %v699_v62 = vpop.permute.xlu0 %698 }
 0x157   : > { %v705_v63 = vsel %vm704_vm1, %v699_v62, %v701_v55  ;;  %v746_v24 = vld [vmem:[#allocation3 + $0x60] sm:$0xf] }
 0x158   : > { %710 = vst [vmem:[#allocation3 + $0x48] sm:$0xf0] %v705_v63 }
 0x15a   : > { %v619_v1 = vpop.permute.xlu1 %618  ;;  %v641_v2 = vpop.permute.xlu0 %640 }
 0x15b   : > { %650 = vst.msk [vmem:[#allocation3 + $0x40] sm:$0xf] %vm567_vm13, %v641_v2 }
 0x15e   : > { %v596_v3 = vpop.permute.xlu1 %595  ;;  %v658_v4 = vpop.permute.xlu0 %657 }
 0x15f   : > { %v664_v5 = vsel %vm663_vm2, %v658_v4, %v660_v59 }
 0x160   : > { %669 = vst [vmem:[#allocation3 + $0x30] sm:$0xf0] %v664_v5 }
 0x162   : > { %v578_v6 = vpop.permute.xlu1 %577  ;;  %v600_v7 = vpop.permute.xlu0 %599 }
 0x163   : > { %609 = vst.msk [vmem:[#allocation3 + $0x28] sm:$0xf] %vm567_vm13, %v600_v7 }
 0x166   : > { %v723_v8 = vpop.permute.xlu1 %722  ;;  %v617_v9 = vpop.permute.xlu0 %616 }
 0x167   : > { %v726_v10 = vsel %vm724_vm0, %v721_v56, %v723_v8  ;;  %732 = vst.msk [vmem:[#allocation3 + $0x70] sm:$0xf] %vm567_vm13, %v723_v8  ;;  %v623_v11 = vsel %vm622_vm3, %v617_v9, %v619_v1 }
 0x168   : > { %731 = vst [vmem:[#allocation3 + $0x68] sm:$0xf] %v726_v10  ;;  %628 = vst [vmem:[#allocation3 + $0x18] sm:$0xf0] %v623_v11 }
 0x16a   : > { %v680_v12 = vpop.permute.xlu1 %679  ;;  %v703_v13 = vpop.permute.xlu0 %702 }
 0x16b   : > { %v684_v14 = vsel %vm683_vm4, %v678_v57, %v680_v12  ;;  %v685_v15 = vsel %vm683_vm4, %v680_v12, %v682_v60  ;;  %v706_v16 = vsel %vm704_vm1, %v701_v55, %v703_v13  ;;  %712 = vst.msk [vmem:[#allocation3 + $0x58] sm:$0xf0] %vm588_vm5, %v703_v13 }
 0x16c   : > { %689 = vst [vmem:[#allocation3 + $0x48] sm:$0xf] %v684_v14  ;;  %690 = vst [vmem:[#allocation3 + $0x50] sm:$0xf] %v685_v15 }
 0x16d   : > { %711 = vst [vmem:[#allocation3 + $0x50] sm:$0xf0] %v706_v16 }
 0x16e   : > { %v639_v17 = vpop.permute.xlu1 %638  ;;  %v662_v18 = vpop.permute.xlu0 %661  ;;  %v748_v19 = vld [vmem:[#allocation3 + $0x70] sm:$0xf] }
 0x16f   : > { %v643_v20 = vsel %vm642_vm6, %v637_v61, %v639_v17  ;;  %v644_v21 = vsel %vm642_vm6, %v639_v17, %v641_v2  ;;  %v665_v22 = vsel %vm663_vm2, %v660_v59, %v662_v18  ;;  %671 = vst.msk [vmem:[#allocation3 + $0x40] sm:$0xf0] %vm588_vm5, %v662_v18  ;;  %1023 = vmatpush3.msk.msra.mxu1 %vm759_vm7, %v748_v19  ;;  %v747_v23 = vld [vmem:[#allocation3 + $0x68] sm:$0xf] }
 0x170   : > { %648 = vst [vmem:[#allocation3 + $0x30] sm:$0xf] %v643_v20  ;;  %649 = vst [vmem:[#allocation3 + $0x38] sm:$0xf] %v644_v21  ;;  %1007 = vmatprep.subr.msk.mxu0 %vm759_vm7, %v747_v23  ;;  %1024 = vmatprep.subr.mxu1 %v1213_v0 }
 0x171   : > { %670 = vst [vmem:[#allocation3 + $0x38] sm:$0xf0] %v665_v22  ;;  %1008 = vmatpush1.msk.msra.mxu0 %vm759_vm7, %v746_v24 }
 0x172   : > { %v598_v25 = vpop.permute.xlu1 %597  ;;  %v621_v26 = vpop.permute.xlu0 %620  ;;  %v745_v27 = vld [vmem:[#allocation3 + $0x58] sm:$0xff] }
 0x173   : > { %v602_v28 = vsel %vm601_vm8, %v596_v3, %v598_v25  ;;  %v603_v29 = vsel %vm601_vm8, %v598_v25, %v600_v7  ;;  %v624_v30 = vsel %vm622_vm3, %v619_v1, %v621_v26  ;;  %630 = vst.msk [vmem:[#allocation3 + $0x28] sm:$0xf0] %vm588_vm5, %v621_v26  ;;  %1025 = vmatpush3.msra.mxu1 %v745_v27  ;;  %v743_v32 = vld [vmem:[#allocation3 + $0x48] sm:$0xff] }
 0x174   : > { %v744_v31 = vld [vmem:[#allocation3 + $0x50] sm:$0xff]  ;;  %607 = vst [vmem:[#allocation3 + $0x18] sm:$0xf] %v602_v28  ;;  %608 = vst [vmem:[#allocation3 + $0x20] sm:$0xf] %v603_v29  ;;  %1026 = vmatprep.subr.mxu1 %v1213_v0 }
 0x175   : > { %629 = vst [vmem:[#allocation3 + $0x20] sm:$0xf0] %v624_v30  ;;  %793 = vmatprep.subr.mxu0 %v744_v31 }
 0x176   : > { %794 = vmatpush1.msra.mxu0 %v743_v32  ;;  %v576_v33 = vpop.permute.xlu1 %575  ;;  %v580_v34 = vpop.permute.xlu0 %579  ;;  %v742_v35 = vld [vmem:[#allocation3 + $0x40] sm:$0xff] }
 0x177   : > { %v581_v36 = vsel %vm350_vm14, %v576_v33, %v578_v6  ;;  %v582_v37 = vsel %vm350_vm14, %v578_v6, %v580_v34  ;;  %589 = vst.msk [vmem:[#allocation3 + $0x10] sm:$0xf0] %vm588_vm5, %v580_v34  ;;  %1027 = vmatpush3.msra.mxu1 %v742_v35  ;;  %v740_v39 = vld [vmem:[#allocation3 + $0x30] sm:$0xff]  ;;  %vm755_vm14 = vcmask 293888  }
 0x178   : > { %v741_v38 = vld [vmem:[#allocation3 + $0x38] sm:$0xff]  ;;  %586 = vst [vmem:[#allocation3] sm:$0xf0] %v581_v36  ;;  %587 = vst [vmem:[#allocation3 + $0x8] sm:$0xf0] %v582_v37  ;;  %1028 = vmatprep.subr.mxu1 %v1213_v0 }
 0x179   : > { %795 = vmatprep.subr.mxu0 %v741_v38 }
 0x17a   : > { %796 = vmatpush1.msra.mxu0 %v740_v39  ;;  %v739_v40 = vld [vmem:[#allocation3 + $0x28] sm:$0xff] }
 0x17b   : > { %1029 = vmatpush3.msra.mxu1 %v739_v40  ;;  %v737_v42 = vld [vmem:[#allocation3 + $0x18] sm:$0xff] }
 0x17c   : > { %v738_v41 = vld [vmem:[#allocation3 + $0x20] sm:$0xff]  ;;  %1030 = vmatprep.subr.mxu1 %v1213_v0 }
 0x17d   : > { %797 = vmatprep.subr.mxu0 %v738_v41 }
 0x17e   : > { %798 = vmatpush1.msra.mxu0 %v737_v42  ;;  %v736_v44 = vld [vmem:[#allocation3 + $0x10] sm:$0xff] }
 0x17f   : > { %1031 = vmatpush3.msra.mxu1 %v736_v44  ;;  %v735_v45 = vld [vmem:[#allocation3 + $0x8] sm:$0xff]  ;;  %v734_v46 = vld [vmem:[#allocation3] sm:$0xff] }
 0x180   : > { %799 = vmatprep.subr.mxu0 %v735_v45  ;;  %1033 = vmatmul.mubr.msk.f32.vlgmr.msra.gmra.mxu1 %vm755_vm14, %v733_v43 }
 0x181   : > { %800 = vmatpush1.msra.mxu0 %v734_v46 }
 0x182   : > { %1009 = vmatmul.mubr.msk.f32.vlgmr.msra.gmra.mxu0 %vm755_vm14, %v733_v43 }
 0x183   : > { %v753_v47 = vpop.permute.xlu0 %752 }
 0x240   : > { %v906_v48 = vpop.f32.mrf.mxu1 }
 0x241   : > { %v907_v0 = vadd.f32 %v906_v48, %v753_v47 }
 0x242   : > { %v835_v49 = vpop.f32.mrf.mxu0  ;;  %v1034_v50 = vpop.f32.mrf.mxu1 }
 0x243   : > { %v836_v51 = vadd.f32 %v835_v49, %v753_v47  ;;  %913 = vst.msk [vmem:[%s188_s27 + $0x10] sm:$0xff] %vm912_vm9, %v907_v0 }
 0x244   : > { %v837_v52 = vpop.f32.mrf.mxu0 }
 0x245   : > { %910 = vst [vmem:[%s188_s27] sm:$0xff] %v836_v51  ;;  %v838_v53 = vadd.f32 %v837_v52, %v753_v47 }
 0x247   : > { %911 = vst [vmem:[%s188_s27 + $0x8] sm:$0xff] %v838_v53 }
 0x248   : > { %1157 = shalt.err (!%p1154_p10)
}
 0x249   : > { %s1158_s6 = scalar_lea.hbm %s927_s9, 384  ;;  %s1162_s19 = scalar_lea.hbm %s1614_s3, 768 }
 0x24a   : > { %p1159_p0 = scmp.ne.s32.totalorder %s927_s9, %s1158_s6  ;;  %p1163_p1 = scmp.lt.s32.totalorder %s927_s9, %s1614_s3 }
 0x24b   : > { %p1164_p3 = scmp.lt.s32.totalorder %s1162_s19, %s1158_s6 }
 0x24c   : > { %p1160_p2 = pnand %p1159_p0, %p1623_p12 }
 0x24d   : > { %p1165_p6 = por %p1164_p3, %p1163_p1 }
 0x24e   : > { %p1161_p9 = pneg %p1160_p2 }
 0x250   : > { %p1166_p11 = pnand %p1165_p6, %p1161_p9 }
 0x252   : > { %1169 = shalt.err (!%p1166_p11)
}
 0x253   : > { %1039 = dma.vmem_to_hbm [thread:$0]  (%p1623_p12), %s930_s28, 384, %s927_s9, %s915_s10  }
 0x254 PF: > { %s941_s17 = sand.u32 1, %s1196_s12   ;;  %p1624_p13 = scmp.ne.s32.totalorder %s1620_s25, 0 }
 0x255   : > { %p1625_p4 = scmp.ge.s32.totalorder %s1208_s15, 2  ;;  %s942_s20 = scalar_lea.sflag [#allocation6], %s941_s17 }
 0x257   : > { %p1046_p5 = pnand %p1625_p4, %p1624_p13 }
 0x259   : > { %p1047_p7 = pneg %p1046_p5 }
 0x25b   : > { %1191 = dma.done.wait (%p1047_p7), %s942_s20, 384  }
 0x25c   : > { %1193 = vsyncadd (%p1047_p7), %s942_s20, 4294966912  ;;  %p16_p8 = scmp.ge.s32.totalorder %s1283_s18, 4   ;;  %s1626_s12 = smov %s1200_s13 }
 0x25d   : > { %s1627_s13 = smov %s1204_s14  ;;  %s1628_s14 = smov %s1295_s21 }
 0x25e   : > { %s1629_s15 = smov %s1283_s18  ;;  %18 = sbr.rel (!%p16_p8) target bundleno = 5 (0x5), region = 77 }
 0x263   :  { %947 = vsyncpa [#allocation5], 1 }
 0x264   :  { %949 = vsyncpa [#allocation5 + $0x1], 1 }
 0x265   :  { %950 = vsyncpa [#allocation6], 1 }
 0x266   :  { %952 = vsyncpa [#allocation6 + $0x1], 1 }

</bundles_post_ra>
